<compile_context>
chip_gen: v7x
topology: tpu7x:2x2x1
jax: 0.10.0
libtpu: 0.0.40
codegen_flags: <defaults>
</compile_context>

<pallas_src>
import jax
import jax.numpy as jnp
from jax.experimental import pallas as pl
from jax.experimental.pallas import tpu as pltpu


def decoder_kernel(x_ref, w1_ref, b1_ref, w2_ref, b2_ref, w3_ref, b3_ref, o_ref):
    # All three matmuls + tanh activations fused, fully VMEM-resident.
    x = x_ref[...]
    h1 = jnp.tanh(
        jnp.dot(x, w1_ref[...], preferred_element_type=jnp.float32) + b1_ref[...]
    )
    h2 = jnp.tanh(
        jnp.dot(h1, w2_ref[...], preferred_element_type=jnp.float32) + b2_ref[...]
    )
    pred = jnp.dot(h2, w3_ref[...], preferred_element_type=jnp.float32) + b3_ref[...]
    o_ref[...] = pred.astype(o_ref.dtype)


def _choose_batch_tile(B):
    """Prefer one fat grid step; only tile when the batch is genuinely large."""
    if B <= 1024:
        return B
    for t in (1024, 512, 256):
        if B % t == 0:
            return t
    return B  # fall back to a single step if nothing divides cleanly


def decoder_forward(x, w1, b1, w2, b2, w3, b3, *, batch_tile=None):
    B, z_dim = x.shape
    hidden1 = w1.shape[1]
    hidden2 = w2.shape[1]
    input_dim = w3.shape[1]

    if batch_tile is None:
        batch_tile = _choose_batch_tile(B)
    assert B % batch_tile == 0, "batch must be divisible by batch_tile"

    num_steps = B // batch_tile
    grid = (num_steps,)

    # x / output tiled over the batch only; weights & biases are constant-index
    # full blocks -> fetched once, VMEM-resident across every grid step.
    in_specs = [
        pl.BlockSpec((batch_tile, z_dim), lambda i: (i, 0)),      # x tile
        pl.BlockSpec((z_dim, hidden1), lambda i: (0, 0)),         # W1 (resident)
        pl.BlockSpec((1, hidden1), lambda i: (0, 0)),             # b1
        pl.BlockSpec((hidden1, hidden2), lambda i: (0, 0)),       # W2 (resident)
        pl.BlockSpec((1, hidden2), lambda i: (0, 0)),             # b2
        pl.BlockSpec((hidden2, input_dim), lambda i: (0, 0)),     # W3 (resident)
        pl.BlockSpec((1, input_dim), lambda i: (0, 0)),           # b3
    ]
    out_spec = pl.BlockSpec((batch_tile, input_dim), lambda i: (i, 0))

    # Only ask for a megacore / parallel split when there are >= 2 grid steps,
    # each with a fat batch tile worth of work; otherwise a single-step grid
    # with "arbitrary" avoids any cross-core sync overhead.
    dim_sem = ("parallel",) if num_steps > 1 else ("arbitrary",)

    return pl.pallas_call(
        decoder_kernel,
        out_shape=jax.ShapeDtypeStruct((B, input_dim), x.dtype),
        grid_spec=pltpu.PrefetchScalarGridSpec(
            num_scalar_prefetch=0,
            grid=grid,
            in_specs=in_specs,
            out_specs=out_spec,
        ),
        compiler_params=pltpu.CompilerParams(
            dimension_semantics=dim_sem,
        ),
    )(x, w1, b1, w2, b2, w3, b3)


def reference_forward(x, w1, b1, w2, b2, w3, b3):
    h1 = jnp.tanh(x @ w1 + b1)
    h2 = jnp.tanh(h1 @ w2 + b2)
    return h2 @ w3 + b3


if __name__ == "__main__":
    # Shapes consistent with Decoder(z_dim=8, hidden_dim1=32, hidden_dim2=32,
    # input_dim=16); batch=16 -> single grid step (whole problem in one block).
    z_dim, hidden_dim1, hidden_dim2, input_dim = 8, 32, 32, 16
    batch = 16

    key = jax.random.PRNGKey(0)
    kx, k1, k2, k3, kb1, kb2, kb3 = jax.random.split(key, 7)

    x = jax.random.normal(kx, (batch, z_dim), dtype=jnp.float32)

    # Deterministic parameter init (Kaiming-uniform-like scale), stored (in, out).
    def init_w(k, fan_in, fan_out):
        bound = 1.0 / jnp.sqrt(fan_in)
        return jax.random.uniform(k, (fan_in, fan_out), jnp.float32, -bound, bound)

    def init_b(k, fan_in, fan_out):
        bound = 1.0 / jnp.sqrt(fan_in)
        return jax.random.uniform(k, (1, fan_out), jnp.float32, -bound, bound)

    w1 = init_w(k1, z_dim, hidden_dim1)
    b1 = init_b(kb1, z_dim, hidden_dim1)
    w2 = init_w(k2, hidden_dim1, hidden_dim2)
    b2 = init_b(kb2, hidden_dim1, hidden_dim2)
    w3 = init_w(k3, hidden_dim2, input_dim)
    b3 = init_b(kb3, hidden_dim2, input_dim)

    # Small case: single grid step, everything VMEM-resident.
    out = decoder_forward(x, w1, b1, w2, b2, w3, b3)
    out = jax.block_until_ready(out)
    ref = reference_forward(x, w1, b1, w2, b2, w3, b3)
    assert out.shape == (batch, input_dim)
    assert jnp.allclose(out, ref, atol=1e-5, rtol=1e-5), "mismatch vs reference (small batch)"

    # Larger batch exercises the fat-tile (>=256 rows) pipelined path.
    big_batch = 2048
    xb = jax.random.normal(kx, (big_batch, z_dim), dtype=jnp.float32)
    out_b = decoder_forward(xb, w1, b1, w2, b2, w3, b3)
    out_b = jax.block_until_ready(out_b)
    ref_b = reference_forward(xb, w1, b1, w2, b2, w3, b3)
    assert out_b.shape == (big_batch, input_dim)
    assert jnp.allclose(out_b, ref_b, atol=1e-5, rtol=1e-5), "mismatch vs reference (large batch)"

    print("KERNEL_OK")
</pallas_src>

<mosaic_0001>
module attributes {stable_mosaic.version = 11 : i64} {
  func.func @decoder_kernel(%arg0: i32, %arg1: memref<16x8xf32, #tpu.memory_space<vmem>>, %arg2: memref<8x32xf32, #tpu.memory_space<vmem>>, %arg3: memref<1x32xf32, #tpu.memory_space<vmem>>, %arg4: memref<32x32xf32, #tpu.memory_space<vmem>>, %arg5: memref<1x32xf32, #tpu.memory_space<vmem>>, %arg6: memref<32x16xf32, #tpu.memory_space<vmem>>, %arg7: memref<1x16xf32, #tpu.memory_space<vmem>>, %arg8: memref<16x16xf32, #tpu.memory_space<vmem>>) attributes {dimension_semantics = [#tpu.dimension_semantics<arbitrary>], iteration_bounds = array<i64: 1>, scalar_prefetch = 0 : i64, scratch_operands = 0 : i64, tpu.core_type = #tpu.core_type<tc>, window_params = [{transform_indices = @transform_0, window_bounds = array<i64: 16, 8>}, {pipeline_mode = #tpu.pipeline_mode<synchronous>, transform_indices = @transform_1, window_bounds = array<i64: 8, 32>}, {pipeline_mode = #tpu.pipeline_mode<synchronous>, transform_indices = @transform_2, window_bounds = array<i64: 1, 32>}, {pipeline_mode = #tpu.pipeline_mode<synchronous>, transform_indices = @transform_3, window_bounds = array<i64: 32, 32>}, {pipeline_mode = #tpu.pipeline_mode<synchronous>, transform_indices = @transform_4, window_bounds = array<i64: 1, 32>}, {pipeline_mode = #tpu.pipeline_mode<synchronous>, transform_indices = @transform_5, window_bounds = array<i64: 32, 16>}, {pipeline_mode = #tpu.pipeline_mode<synchronous>, transform_indices = @transform_6, window_bounds = array<i64: 1, 16>}, {transform_indices = @transform_7, window_bounds = array<i64: 16, 16>}]} {
    %c0 = arith.constant 0 : index
    %c0_0 = arith.constant 0 : index
    %0 = vector.load %arg1[%c0, %c0_0] : memref<16x8xf32, #tpu.memory_space<vmem>>, vector<16x8xf32>
    %c0_1 = arith.constant 0 : index
    %c0_2 = arith.constant 0 : index
    %1 = vector.load %arg2[%c0_1, %c0_2] : memref<8x32xf32, #tpu.memory_space<vmem>>, vector<8x32xf32>
    %cst = arith.constant dense<0.000000e+00> : vector<16x32xf32>
    %2 = tpu.matmul %0, %1, %cst {dimension_numbers = #tpu.dot_dimension_numbers<[1], [0], [0], [1], [0, 0, 1, 1], [], []>} : vector<16x8xf32>, vector<8x32xf32>, vector<16x32xf32> -> vector<16x32xf32>
    %c0_3 = arith.constant 0 : index
    %c0_4 = arith.constant 0 : index
    %3 = vector.load %arg3[%c0_3, %c0_4] : memref<1x32xf32, #tpu.memory_space<vmem>>, vector<1x32xf32>
    %4 = vector.broadcast %3 : vector<1x32xf32> to vector<16x32xf32>
    %5 = arith.addf %2, %4 : vector<16x32xf32>
    %6 = math.tanh %5 : vector<16x32xf32>
    %c0_5 = arith.constant 0 : index
    %c0_6 = arith.constant 0 : index
    %7 = vector.load %arg4[%c0_5, %c0_6] : memref<32x32xf32, #tpu.memory_space<vmem>>, vector<32x32xf32>
    %cst_7 = arith.constant dense<0.000000e+00> : vector<16x32xf32>
    %8 = tpu.matmul %6, %7, %cst_7 {dimension_numbers = #tpu.dot_dimension_numbers<[1], [0], [0], [1], [0, 0, 1, 1], [], []>} : vector<16x32xf32>, vector<32x32xf32>, vector<16x32xf32> -> vector<16x32xf32>
    %c0_8 = arith.constant 0 : index
    %c0_9 = arith.constant 0 : index
    %9 = vector.load %arg5[%c0_8, %c0_9] : memref<1x32xf32, #tpu.memory_space<vmem>>, vector<1x32xf32>
    %10 = vector.broadcast %9 : vector<1x32xf32> to vector<16x32xf32>
    %11 = arith.addf %8, %10 : vector<16x32xf32>
    %12 = math.tanh %11 : vector<16x32xf32>
    %c0_10 = arith.constant 0 : index
    %c0_11 = arith.constant 0 : index
    %13 = vector.load %arg6[%c0_10, %c0_11] : memref<32x16xf32, #tpu.memory_space<vmem>>, vector<32x16xf32>
    %cst_12 = arith.constant dense<0.000000e+00> : vector<16x16xf32>
    %14 = tpu.matmul %12, %13, %cst_12 {dimension_numbers = #tpu.dot_dimension_numbers<[1], [0], [0], [1], [0, 0, 1, 1], [], []>} : vector<16x32xf32>, vector<32x16xf32>, vector<16x16xf32> -> vector<16x16xf32>
    %c0_13 = arith.constant 0 : index
    %c0_14 = arith.constant 0 : index
    %15 = vector.load %arg7[%c0_13, %c0_14] : memref<1x16xf32, #tpu.memory_space<vmem>>, vector<1x16xf32>
    %16 = vector.broadcast %15 : vector<1x16xf32> to vector<16x16xf32>
    %17 = arith.addf %14, %16 : vector<16x16xf32>
    %c0_15 = arith.constant 0 : index
    %c0_16 = arith.constant 0 : index
    %18 = vector.load %arg8[%c0_15, %c0_16] : memref<16x16xf32, #tpu.memory_space<vmem>>, vector<16x16xf32>
    tpu.vector_store %arg8[%c0_15, %c0_16], %17 {strides = array<i32>} : memref<16x16xf32, #tpu.memory_space<vmem>>, vector<16x16xf32>,
    return
  }
  func.func @transform_0(%arg0: i32) -> (i32, i32) {
    %c0_i32 = arith.constant 0 : i32
    %c0_i32_0 = arith.constant 0 : i32
    return %arg0, %c0_i32 : i32, i32
  }
  func.func @transform_1(%arg0: i32) -> (i32, i32) {
    %c0_i32 = arith.constant 0 : i32
    %c0_i32_0 = arith.constant 0 : i32
    %c0_i32_1 = arith.constant 0 : i32
    return %c0_i32, %c0_i32_0 : i32, i32
  }
  func.func @transform_2(%arg0: i32) -> (i32, i32) {
    %c0_i32 = arith.constant 0 : i32
    %c0_i32_0 = arith.constant 0 : i32
    %c0_i32_1 = arith.constant 0 : i32
    return %c0_i32, %c0_i32_0 : i32, i32
  }
  func.func @transform_3(%arg0: i32) -> (i32, i32) {
    %c0_i32 = arith.constant 0 : i32
    %c0_i32_0 = arith.constant 0 : i32
    %c0_i32_1 = arith.constant 0 : i32
    return %c0_i32, %c0_i32_0 : i32, i32
  }
  func.func @transform_4(%arg0: i32) -> (i32, i32) {
    %c0_i32 = arith.constant 0 : i32
    %c0_i32_0 = arith.constant 0 : i32
    %c0_i32_1 = arith.constant 0 : i32
    return %c0_i32, %c0_i32_0 : i32, i32
  }
  func.func @transform_5(%arg0: i32) -> (i32, i32) {
    %c0_i32 = arith.constant 0 : i32
    %c0_i32_0 = arith.constant 0 : i32
    %c0_i32_1 = arith.constant 0 : i32
    return %c0_i32, %c0_i32_0 : i32, i32
  }
  func.func @transform_6(%arg0: i32) -> (i32, i32) {
    %c0_i32 = arith.constant 0 : i32
    %c0_i32_0 = arith.constant 0 : i32
    %c0_i32_1 = arith.constant 0 : i32
    return %c0_i32, %c0_i32_0 : i32, i32
  }
  func.func @transform_7(%arg0: i32) -> (i32, i32) {
    %c0_i32 = arith.constant 0 : i32
    %c0_i32_0 = arith.constant 0 : i32
    return %arg0, %c0_i32 : i32, i32
  }
}

</mosaic_0001>

<bundles_post_ra>
// kernel: tpu_custom_call.1
= control target key start
LH: loop header
LB: loop body
LE: loop exit
PB: predicated region body
PF: predicated region fallthrough
CT: control target
= control target key end

     0   :  { %vm37_vm0 = vcmask 64512   ;;  %s530_s0 = inlined_call_operand.vmem [shape: f32[16,8], index: 0, kind: input, shape index: {}]   ;;  %s531_s1 = inlined_call_operand.vmem [shape: f32[8,32], index: 1, kind: input, shape index: {}]   ;;  %s532_s2 = inlined_call_operand.vmem [shape: f32[1,32], index: 2, kind: input, shape index: {}]   ;;  %s533_s3 = inlined_call_operand.vmem [shape: f32[32,32], index: 3, kind: input, shape index: {}]   ;;  %s534_s4 = inlined_call_operand.vmem [shape: f32[1,32], index: 4, kind: input, shape index: {}]   ;;  %s535_s5 = inlined_call_operand.vmem [shape: f32[32,16], index: 5, kind: input, shape index: {}]   ;;  %s536_s6 = inlined_call_operand.vmem [shape: f32[1,16], index: 6, kind: input, shape index: {}]   ;;  %s537_s7 = inlined_call_operand.hbm [shape: f32[16,16], index: 7, kind: output, shape index: {}]  }
   0x1   :  { %v29_v0 = vld [vmem:[%s531_s1] sm:$0xff]  ;;  %v28_v2 = vld [vmem:[%s530_s0 + $0x8] sm:$0xff] }
   0x2   :  { %v27_v1 = vld [vmem:[%s530_s0] sm:$0xff]  ;;  %351 = vmatprep.subr.mxu0 %v29_v0 }
   0x3   :  { %353 = vmatprep.mubr.msk.f32.mxu0 %vm37_vm0, %v27_v1 }
   0x4   :  { %12 = vsyncpa [#allocation3], 0  ;;  %352 = vmatpush3.msra.mxu0 %v29_v0  ;;  %v121_v3 = vld [vmem:[%s533_s3] sm:$0xff]  ;;  %v122_v4 = vld [vmem:[%s533_s3 + $0x8] sm:$0xff]  ;;  %vm132_vm1 = vcmask 261120   ;;  %s429_s24 = smov [#allocation2]  }
   0x5   :  { %354 = vmatmul.mubr.msk.f32.vlgmr.msra.gmra.mrb[0].mxu0 %vm37_vm0, %v28_v2  ;;  %v123_v5 = vld [vmem:[%s533_s3 + $0x10] sm:$0xff]  ;;  %v378_v6 = vpack.c.bf16 %v122_v4, %v121_v3  ;;  %v124_v7 = vld [vmem:[%s533_s3 + $0x18] sm:$0xff]  ;;  %v327_v9 = vld [vmem:[%s532_s2] ss:$0 sm:$0xff]  ;;  %s316_s25 = sshll.u32 %s429_s24, 4  ;;  %vm308_vm2 = vcmask 130048   ;;  %s317_s25 = int_to_ptr.vmem [resolvable:$true] %s316_s25 }
   0x6   :  { %v382_v8 = vpack.c.bf16 %v124_v7, %v123_v5  ;;  %v216_v16 = vld [vmem:[%s535_s5] sm:$0xff]  ;;  %v217_v17 = vld [vmem:[%s535_s5 + $0x8] sm:$0xff]  ;;  %v218_v18 = vld [vmem:[%s535_s5 + $0x10] sm:$0xff]  ;;  %p410_p1 = scmp.lt.s32.totalorder %s317_s25, %s317_s25 }
   0x7   :  { %379 = vmatprep.subr.bf16.mxu1 %v378_v6  ;;  %v386_v19 = vpack.c.bf16 %v217_v17, %v216_v16  ;;  %v219_v20 = vld [vmem:[%s535_s5 + $0x18] sm:$0xff]  ;;  %v330_v22 = vld [vmem:[%s534_s4] ss:$0 sm:$0xff]  ;;  %s405_s4 = scalar_lea.vmem %s317_s25, 256 }
   0x8   :  { %381 = vmatpush3.bf16.msra.mxu1 %v378_v6  ;;  %v390_v21 = vpack.c.bf16 %v219_v20, %v218_v18  ;;  %v333_v29 = vld [vmem:[%s536_s6] ss:$0 sm:$0xff]  ;;  %p406_p0 = scmp.ne.s32.totalorder %s317_s25, %s405_s4  ;;  %p411_p2 = scmp.lt.s32.totalorder %s405_s4, %s405_s4 }
   0x9   :  { %383 = vmatprep.subr.bf16.mxu1 %v382_v8  ;;  %387 = vmatprep.subr.bf16.mxu0 %v386_v19 }
   0xa   :  { %389 = vmatpush3.bf16.msra.mxu0 %v386_v19  ;;  %p412_p3 = por %p411_p2, %p410_p1 }
   0xb   :  { %391 = vmatprep.subr.bf16.mxu0 %v390_v21 }
   0xc   :  { %385 = vmatpush3.bf16.msra.mxu1 %v382_v8  ;;  %p413_p4 = pnand %p412_p3, %p406_p0 }
   0xe   :  { %393 = vmatpush3.bf16.msra.mxu0 %v390_v21 }
  0xd8   :  { %v355_v10 = vpop.f32.mrb[0].mxu0 }
  0xd9   :  { %v116_v11 = vadd.f32 %v355_v10, %v327_v9  ;;  %v110_v12 = vpop.f32.mrb[1].mxu0 }
  0xda   :  { %v111_v13 = vadd.f32 %v327_v9, %v110_v12 }
  0xdc   :  { %397 = vtanh.f32 %v111_v13 }
  0xdd   :  { %399 = vtanh.f32 %v116_v11 }
  0xe6   :  { %v398_v14 = vpop.eup %397 }
  0xe7   :  { %v400_v15 = vpop.eup %399  ;;  %364 = vmatprep.mubr.msk.f32.mxu1 %vm132_vm1, %v398_v14 }
  0xe8   :  { %365 = vmatmul.mubr.msk.f32.vlgmr.msra.gmra.mrb[0].mxu1 %vm132_vm1, %v400_v15 }
 0x1bb   :  { %v366_v23 = vpop.f32.mrb[0].mxu1 }
 0x1bc   :  { %v211_v24 = vadd.f32 %v366_v23, %v330_v22  ;;  %v205_v25 = vpop.f32.mrb[1].mxu1 }
 0x1bd   :  { %v206_v26 = vadd.f32 %v330_v22, %v205_v25 }
 0x1bf   :  { %401 = vtanh.f32 %v206_v26 }
 0x1c0   :  { %403 = vtanh.f32 %v211_v24 }
 0x1c9   :  { %v402_v27 = vpop.eup %401 }
 0x1ca   :  { %v404_v28 = vpop.eup %403  ;;  %375 = vmatprep.mubr.msk.f32.mxu0 %vm132_vm1, %v402_v27 }
 0x1cb   :  { %376 = vmatmul.mubr.msk.f32.vlgmr.msra.gmra.mrb[2].mxu0 %vm132_vm1, %v404_v28 }
 0x29e   :  { %v377_v30 = vpop.f32.mrb[2].mxu0 }
 0x29f   :  { %v305_v31 = vadd.f32 %v377_v30, %v333_v29  ;;  %v299_v32 = vpop.f32.mrb[3].mxu0 }
 0x2a0   :  { %v300_v33 = vadd.f32 %v333_v29, %v299_v32 }
 0x2a1   :  { %310 = vst.msk [vmem:[#allocation2 + $0x8] sm:$0xff] %vm308_vm2, %v305_v31 }
 0x2a2   :  { %309 = vst.msk [vmem:[#allocation2] sm:$0xff] %vm308_vm2, %v300_v33 }
 0x2a3   :  { %416 = shalt.err (!%p413_p4)
}
 0x2a4   :  { %s417_s6 = scalar_lea.hbm %s537_s7, 256 }
 0x2a5   :  { %p418_p5 = scmp.ne.s32.totalorder %s537_s7, %s417_s6  ;;  %p421_p6 = scmp.lt.u32.totalorder %s417_s6, %s537_s7 }
 0x2a7   :  { %p423_p7 = pnand %p421_p6, %p418_p5 }
 0x2a9   :  { %426 = shalt.err (!%p423_p7)
}
 0x2aa   :  { %s430_s9 = smov 128   ;;  %s431_s1 = smov 8  }
 0x2ab   :  { %322 = dma.vmem_to_hbm [thread:$0]  %s317_s25, 256, %s537_s7, [#allocation3], %s430_s9, %s430_s9, %s431_s1  }
 0x2ac   :  { %427 = dma.done.wait [#allocation3], 256  }
 0x2ad   :  { %428 = vsyncadd [#allocation3], 4294967040 }
 0x2ae   :  { %326 = vsyncpa [#allocation3], 1 }

</bundles_post_ra>
